<compile_context>
chip_gen: v7x
topology: tpu7x:2x2x1
jax: 0.10.0
libtpu: 0.0.40
codegen_flags: <defaults>
</compile_context>

<pallas_src>
import functools

import jax
import jax.numpy as jnp
from jax.experimental import pallas as pl
from jax.experimental.pallas import tpu as pltpu

_MiB = 1024 * 1024
_VMEM_BUDGET = 40 * _MiB          # conservative: fits v7x's 64 MiB physical VMEM


def _round_up(a, m):
    return ((a + m - 1) // m) * m


def _vmem_limit(need_bytes):
    # headroom for Mosaic internal scratch; never exceed v7x's 64 MiB physical ceiling
    return int(min(64 * _MiB, max(need_bytes + 8 * _MiB, 32 * _MiB)))


# ---------------------------------------------------------------------------
# Normalized adjacency, built directly into the padded bf16 buffer.
# A[dst, src] += 1 per edge; diag forced to 1 (add_remaining_self_loops, unit
# weights); deg = scatter_add over sources == column sum; Â = D^-1/2 A D^-1/2.
# ---------------------------------------------------------------------------
def _build_norm_adj_padded(edge_index, num_nodes, npad):
    src, dst = edge_index[0], edge_index[1]
    A = jnp.zeros((npad, npad), jnp.float32).at[dst, src].add(1.0)
    idx = jnp.arange(num_nodes)
    A = A.at[idx, idx].set(1.0)
    deg = A.sum(axis=0)                                  # out-degree of source
    dis = jnp.where(deg > 0.0, jax.lax.rsqrt(deg), 0.0)
    return (A * (dis[None, :] * dis[:, None])).astype(jnp.bfloat16)


# ---------------------------------------------------------------------------
# FUSED kernel: all layers in one pallas_call, Â / x / intermediate VMEM-resident.
# ---------------------------------------------------------------------------
def gcn_fused_kernel(adj_ref, x_ref, w_ref, b_ref, o_ref, *, num_layers):
    adj = adj_ref[...]
    h = x_ref[...]
    for l in range(num_layers):
        acc = jnp.dot(adj, h, preferred_element_type=jnp.float32)
        out = acc * w_ref[l] + b_ref[l]
        if l < num_layers - 1:
            h = jnp.maximum(out, 0.0).astype(jnp.bfloat16)
        else:
            o_ref[...] = out


def _fused_vmem_need(npad, hp, num_layers):
    return (2 * npad * npad * 2        # Â (conservatively double-buffered)
            + 2 * npad * hp * 2        # x
            + 2 * npad * hp * 4        # f32 output
            + npad * hp * 6            # in-kernel f32 intermediate + bf16 copy
            + 2 * num_layers * hp * 4 * 2)


def gcn_fused(adj_bf16, x_bf16, w_stack, b_stack, *, num_layers):
    npad = adj_bf16.shape[0]
    hp = x_bf16.shape[1]
    need = _fused_vmem_need(npad, hp, num_layers)
    flops = num_layers * 2 * npad * npad * hp
    bytes_accessed = npad * npad * 2 + npad * hp * 2 + npad * hp * 4

    return pl.pallas_call(
        functools.partial(gcn_fused_kernel, num_layers=num_layers),
        out_shape=jax.ShapeDtypeStruct((npad, hp), jnp.float32),
        grid_spec=pltpu.PrefetchScalarGridSpec(
            num_scalar_prefetch=0,
            grid=(1,),
            in_specs=[
                pl.BlockSpec((npad, npad), lambda i: (0, 0)),
                pl.BlockSpec((npad, hp), lambda i: (0, 0)),
                pl.BlockSpec((num_layers, hp), lambda i: (0, 0)),
                pl.BlockSpec((num_layers, hp), lambda i: (0, 0)),
            ],
            out_specs=pl.BlockSpec((npad, hp), lambda i: (0, 0)),
        ),
        compiler_params=pltpu.CompilerParams(
            dimension_semantics=("arbitrary",),
            vmem_limit_bytes=_vmem_limit(need)),
        cost_estimate=pl.CostEstimate(
            flops=flops, transcendentals=0, bytes_accessed=bytes_accessed),
    )(adj_bf16, x_bf16, w_stack, b_stack)


# ---------------------------------------------------------------------------
# TILED per-layer kernel (fallback):  acc(i) = sum_k Â[i,k] @ x[k]
#   x is VMEM-resident for the whole layer (full-extent block), sliced in-kernel.
#   Epilogue applies w/b (+relu) on the output tile; non-final layers emit bf16.
# ---------------------------------------------------------------------------
def gcn_layer_kernel(adj_ref, x_ref, w_ref, b_ref, o_ref, acc_ref, *,
                     apply_relu, tk, x_resident):
    k = pl.program_id(1)

    @pl.when(k == 0)
    def _():
        acc_ref[...] = jnp.zeros_like(acc_ref)

    if x_resident:
        xk = x_ref[pl.ds(pl.multiple_of(k * tk, tk), tk), :]
    else:
        xk = x_ref[...]
    acc_ref[...] += jnp.dot(adj_ref[...], xk, preferred_element_type=jnp.float32)

    @pl.when(k == pl.num_programs(1) - 1)
    def _():
        out = acc_ref[...] * w_ref[...] + b_ref[...]
        if apply_relu:
            out = jnp.maximum(out, 0.0)
        o_ref[...] = out.astype(o_ref.dtype)


def _pick_tiles(npad, hp, x_resident):
    # Row tile: as large as possible but keep >= 2 row blocks (megacore) when npad allows.
    tm = 128
    for cand in (512, 256, 128):
        if npad % cand == 0 and (npad // cand >= 2 or cand == 128):
            tm = cand
            break
    # K tile: largest divisor of npad (<= 2048) whose buffers still fit the VMEM budget.
    fixed = ((2 * npad * hp * 2 if x_resident else 0)
             + tm * hp * 4 + 2 * tm * hp * 4 + 4 * hp * 4 * 2)
    tk = 128
    for cand in (2048, 1024, 512, 256, 128):
        if npad % cand != 0:
            continue
        adj_bytes = 2 * tm * cand * 2
        x_stream = 0 if x_resident else 2 * cand * hp * 2
        if fixed + adj_bytes + x_stream <= _VMEM_BUDGET:
            tk = cand
            break
    return tm, tk


def gcn_layer(adj_bf16, x_bf16, w, b, *, apply_relu, tm, tk, x_resident):
    npad = adj_bf16.shape[0]
    hp = x_bf16.shape[1]
    grid = (npad // tm, npad // tk)
    out_dtype = jnp.bfloat16 if apply_relu else jnp.float32
    out_bytes = 2 if apply_relu else 4

    if x_resident:
        x_spec = pl.BlockSpec((npad, hp), lambda i, k: (0, 0))   # DMA'd once, stays resident
    else:
        x_spec = pl.BlockSpec((tk, hp), lambda i, k: (k, 0))     # streamed K-slab fallback

    kern = functools.partial(gcn_layer_kernel, apply_relu=apply_relu,
                             tk=tk, x_resident=x_resident)

    need = (2 * tm * tk * 2
            + (2 * npad * hp * 2 if x_resident else 2 * tk * hp * 2)
            + tm * hp * 4
            + 2 * tm * hp * out_bytes
            + 4 * hp * 4 * 2)
    flops = 2 * npad * npad * hp
    bytes_accessed = (npad * npad * 2
                      + (npad * hp * 2 if x_resident else grid[0] * npad * hp * 2)
                      + npad * hp * out_bytes)

    return pl.pallas_call(
        kern,
        out_shape=jax.ShapeDtypeStruct((npad, hp), out_dtype),
        grid_spec=pltpu.PrefetchScalarGridSpec(
            num_scalar_prefetch=0,
            grid=grid,
            in_specs=[
                pl.BlockSpec((tm, tk), lambda i, k: (i, k)),     # adjacency tile
                x_spec,                                          # features
                pl.BlockSpec((1, hp), lambda i, k: (0, 0)),      # layer weight (1, hp)
                pl.BlockSpec((1, hp), lambda i, k: (0, 0)),      # layer bias   (1, hp)
            ],
            out_specs=pl.BlockSpec((tm, hp), lambda i, k: (i, 0)),
            scratch_shapes=[pltpu.VMEM((tm, hp), jnp.float32)],
        ),
        compiler_params=pltpu.CompilerParams(
            dimension_semantics=("parallel", "arbitrary"),
            vmem_limit_bytes=_vmem_limit(need)),
        cost_estimate=pl.CostEstimate(
            flops=flops, transcendentals=0, bytes_accessed=bytes_accessed),
    )(adj_bf16, x_bf16, w, b)


# ---------------------------------------------------------------------------
# Whole forward (jitted once): adjacency build + padding + fused/tiled kernels.
# ---------------------------------------------------------------------------
def _encoder_forward(edges, x, weights, biases, *, num_layers, h_out, allow_fused):
    N, H = x.shape
    hp = _round_up(max([H, h_out, 128] + [w.shape[1] for w in weights]), 128)
    npad = _round_up(max(N, 128), 128)

    adj_p = _build_norm_adj_padded(edges.T, N, npad)                  # bf16 (npad, npad)
    x_p = jnp.pad(x.astype(jnp.float32),
                  ((0, npad - N), (0, hp - H))).astype(jnp.bfloat16)

    w_pads = [jnp.pad(w, ((0, 0), (0, hp - w.shape[1]))) for w in weights]
    b_pads = [jnp.pad(b, ((0, 0), (0, hp - b.shape[1]))) for b in biases]

    use_fused = (allow_fused and num_layers >= 1
                 and _fused_vmem_need(npad, hp, num_layers) <= _VMEM_BUDGET)

    if use_fused:
        w_stack = jnp.concatenate(w_pads, axis=0)                     # (L, hp)
        b_stack = jnp.concatenate(b_pads, axis=0)
        out = gcn_fused(adj_p, x_p, w_stack, b_stack, num_layers=num_layers)
    else:
        x_resident = 2 * npad * hp * 2 <= _VMEM_BUDGET // 2
        tm, tk = _pick_tiles(npad, hp, x_resident)
        out = x_p
        for l in range(num_layers):
            out = gcn_layer(adj_p, out, w_pads[l], b_pads[l],
                            apply_relu=(l != num_layers - 1),
                            tm=tm, tk=tk, x_resident=x_resident)

    return out[:N, :h_out]


# ---------------------------------------------------------------------------
# Encoder (name="gcn-align"); per reset_parameters: weight=ones, bias=zeros.
# feat_drop = 0.0 -> dropout is identity.  GAT submodule unused -> omitted.
# ---------------------------------------------------------------------------
class EncoderGCNAlign:
    def __init__(self, hiddens, allow_fused=True):
        self.hiddens = list(hiddens)
        self.num_layers = len(hiddens) - 1
        self.weights = tuple(jnp.ones((1, hiddens[l + 1]), jnp.float32)
                             for l in range(self.num_layers))
        self.biases = tuple(jnp.zeros((1, hiddens[l + 1]), jnp.float32)
                            for l in range(self.num_layers))
        self._fwd = jax.jit(functools.partial(
            _encoder_forward, num_layers=self.num_layers,
            h_out=hiddens[-1], allow_fused=allow_fused))

    def __call__(self, edges, x):
        # edges: (E, 2) as at the PyTorch call site; transposed inside (edges.t())
        return self._fwd(edges, x, self.weights, self.biases)


# pure-JAX reference with matching bf16-matmul / f32-accumulate semantics
def encoder_ref(enc, edges, x):
    N = x.shape[0]
    adj = _build_norm_adj_padded(edges.T, N, N)                       # bf16 (N, N)
    h = x.astype(jnp.float32)
    for l in range(enc.num_layers):
        agg = jnp.dot(adj, h.astype(jnp.bfloat16),
                      preferred_element_type=jnp.float32)
        h = agg * enc.weights[l] + enc.biases[l]
        if l != enc.num_layers - 1:
            h = jnp.maximum(h, 0.0)
    return h


if __name__ == "__main__":
    N, H, E = 64, 32, 200
    key = jax.random.PRNGKey(0)
    kx, ks, kd = jax.random.split(key, 3)

    x = jax.random.normal(kx, (N, H), dtype=jnp.float32)
    # random edges with no self-loops (add_remaining_self_loops then adds diag=1)
    src = jax.random.randint(ks, (E,), 0, N, dtype=jnp.int32)
    off = jax.random.randint(kd, (E,), 1, N, dtype=jnp.int32)
    dst = (src + off) % N
    edges = jnp.stack([src, dst], axis=1)          # (E, 2), as passed to Encoder.forward

    enc_fused = EncoderGCNAlign(hiddens=[H, H, H], allow_fused=True)   # fused path
    enc_tiled = EncoderGCNAlign(hiddens=[H, H, H], allow_fused=False)  # tiled path

    out_fused = jax.block_until_ready(enc_fused(edges, x))
    out_tiled = jax.block_until_ready(enc_tiled(edges, x))

    ref = encoder_ref(enc_fused, edges, x)
    assert out_fused.shape == (N, H) and out_tiled.shape == (N, H)
    assert jnp.allclose(out_fused, ref, atol=2e-3, rtol=2e-3)
    assert jnp.allclose(out_tiled, ref, atol=2e-3, rtol=2e-3)

    print("KERNEL_OK")
</pallas_src>

<mosaic_0001>
module attributes {stable_mosaic.version = 11 : i64} {
  func.func @gcn_fused_kernel(%arg0: i32, %arg1: memref<128x128xbf16, #tpu.memory_space<vmem>>, %arg2: memref<128x128xbf16, #tpu.memory_space<vmem>>, %arg3: memref<2x128xf32, #tpu.memory_space<vmem>>, %arg4: memref<2x128xf32, #tpu.memory_space<vmem>>, %arg5: memref<128x128xf32, #tpu.memory_space<vmem>>) attributes {dimension_semantics = [#tpu.dimension_semantics<arbitrary>], iteration_bounds = array<i64: 1>, scalar_prefetch = 0 : i64, scratch_operands = 0 : i64, tpu.core_type = #tpu.core_type<tc>, window_params = [{pipeline_mode = #tpu.pipeline_mode<synchronous>, transform_indices = @transform_0, window_bounds = array<i64: 128, 128>}, {pipeline_mode = #tpu.pipeline_mode<synchronous>, transform_indices = @transform_1, window_bounds = array<i64: 128, 128>}, {pipeline_mode = #tpu.pipeline_mode<synchronous>, transform_indices = @transform_2, window_bounds = array<i64: 2, 128>}, {pipeline_mode = #tpu.pipeline_mode<synchronous>, transform_indices = @transform_3, window_bounds = array<i64: 2, 128>}, {pipeline_mode = #tpu.pipeline_mode<synchronous>, transform_indices = @transform_4, window_bounds = array<i64: 128, 128>}]} {
    %c0 = arith.constant 0 : index
    %c0_0 = arith.constant 0 : index
    %0 = vector.load %arg1[%c0, %c0_0] : memref<128x128xbf16, #tpu.memory_space<vmem>>, vector<128x128xbf16>
    %c0_1 = arith.constant 0 : index
    %c0_2 = arith.constant 0 : index
    %1 = vector.load %arg2[%c0_1, %c0_2] : memref<128x128xbf16, #tpu.memory_space<vmem>>, vector<128x128xbf16>
    %cst = arith.constant dense<0.000000e+00> : vector<128x128xf32>
    %2 = tpu.matmul %0, %1, %cst {dimension_numbers = #tpu.dot_dimension_numbers<[1], [0], [0], [1], [0, 0, 1, 1], [], []>} : vector<128x128xbf16>, vector<128x128xbf16>, vector<128x128xf32> -> vector<128x128xf32>
    %c0_3 = arith.constant 0 : index
    %c0_4 = arith.constant 0 : index
    %3 = vector.load %arg3[%c0_3, %c0_4] : memref<2x128xf32, #tpu.memory_space<vmem>>, vector<1x128xf32>
    %4 = vector.shape_cast %3 : vector<1x128xf32> to vector<128xf32>
    %5 = vector.shape_cast %4 : vector<128xf32> to vector<1x128xf32>
    %6 = vector.broadcast %5 : vector<1x128xf32> to vector<128x128xf32>
    %7 = arith.mulf %2, %6 : vector<128x128xf32>
    %c0_5 = arith.constant 0 : index
    %c0_6 = arith.constant 0 : index
    %8 = vector.load %arg4[%c0_5, %c0_6] : memref<2x128xf32, #tpu.memory_space<vmem>>, vector<1x128xf32>
    %9 = vector.shape_cast %8 : vector<1x128xf32> to vector<128xf32>
    %10 = vector.shape_cast %9 : vector<128xf32> to vector<1x128xf32>
    %11 = vector.broadcast %10 : vector<1x128xf32> to vector<128x128xf32>
    %12 = arith.addf %7, %11 : vector<128x128xf32>
    %cst_7 = arith.constant 0.000000e+00 : f32
    %13 = vector.broadcast %cst_7 : f32 to vector<128x128xf32>
    %14 = arith.maximumf %12, %13 : vector<128x128xf32>
    %15 = arith.truncf %14 : vector<128x128xf32> to vector<128x128xbf16>
    %cst_8 = arith.constant dense<0.000000e+00> : vector<128x128xf32>
    %16 = tpu.matmul %0, %15, %cst_8 {dimension_numbers = #tpu.dot_dimension_numbers<[1], [0], [0], [1], [0, 0, 1, 1], [], []>} : vector<128x128xbf16>, vector<128x128xbf16>, vector<128x128xf32> -> vector<128x128xf32>
    %c1 = arith.constant 1 : index
    %c0_9 = arith.constant 0 : index
    %17 = vector.load %arg3[%c1, %c0_9] : memref<2x128xf32, #tpu.memory_space<vmem>>, vector<1x128xf32>
    %18 = vector.shape_cast %17 : vector<1x128xf32> to vector<128xf32>
    %19 = vector.shape_cast %18 : vector<128xf32> to vector<1x128xf32>
    %20 = vector.broadcast %19 : vector<1x128xf32> to vector<128x128xf32>
    %21 = arith.mulf %16, %20 : vector<128x128xf32>
    %c1_10 = arith.constant 1 : index
    %c0_11 = arith.constant 0 : index
    %22 = vector.load %arg4[%c1_10, %c0_11] : memref<2x128xf32, #tpu.memory_space<vmem>>, vector<1x128xf32>
    %23 = vector.shape_cast %22 : vector<1x128xf32> to vector<128xf32>
    %24 = vector.shape_cast %23 : vector<128xf32> to vector<1x128xf32>
    %25 = vector.broadcast %24 : vector<1x128xf32> to vector<128x128xf32>
    %26 = arith.addf %21, %25 : vector<128x128xf32>
    %c0_12 = arith.constant 0 : index
    %c0_13 = arith.constant 0 : index
    %27 = vector.load %arg5[%c0_12, %c0_13] : memref<128x128xf32, #tpu.memory_space<vmem>>, vector<128x128xf32>
    tpu.vector_store %arg5[%c0_12, %c0_13], %26 {strides = array<i32>} : memref<128x128xf32, #tpu.memory_space<vmem>>, vector<128x128xf32>,
    return
  }
  func.func @transform_0(%arg0: i32) -> (i32, i32) {
    %c0_i32 = arith.constant 0 : i32
    %c0_i32_0 = arith.constant 0 : i32
    %c0_i32_1 = arith.constant 0 : i32
    return %c0_i32, %c0_i32_0 : i32, i32
  }
  func.func @transform_1(%arg0: i32) -> (i32, i32) {
    %c0_i32 = arith.constant 0 : i32
    %c0_i32_0 = arith.constant 0 : i32
    %c0_i32_1 = arith.constant 0 : i32
    return %c0_i32, %c0_i32_0 : i32, i32
  }
  func.func @transform_2(%arg0: i32) -> (i32, i32) {
    %c0_i32 = arith.constant 0 : i32
    %c0_i32_0 = arith.constant 0 : i32
    %c0_i32_1 = arith.constant 0 : i32
    return %c0_i32, %c0_i32_0 : i32, i32
  }
  func.func @transform_3(%arg0: i32) -> (i32, i32) {
    %c0_i32 = arith.constant 0 : i32
    %c0_i32_0 = arith.constant 0 : i32
    %c0_i32_1 = arith.constant 0 : i32
    return %c0_i32, %c0_i32_0 : i32, i32
  }
  func.func @transform_4(%arg0: i32) -> (i32, i32) {
    %c0_i32 = arith.constant 0 : i32
    %c0_i32_0 = arith.constant 0 : i32
    %c0_i32_1 = arith.constant 0 : i32
    return %c0_i32, %c0_i32_0 : i32, i32
  }
}

</mosaic_0001>

<bundles_post_ra>
// kernel: _encoder_forward.1
= control target key start
LH: loop header
LB: loop body
LE: loop exit
PB: predicated region body
PF: predicated region fallthrough
CT: control target
= control target key end

     0   :  { %s797_s1 = inlined_call_operand.vmem [shape: bf16[128,128], index: 1, kind: input, shape index: {}]   ;;  %s798_s0 = inlined_call_operand.vmem [shape: bf16[128,128], index: 0, kind: input, shape index: {}]   ;;  %s799_s2 = inlined_call_operand.vmem [shape: f32[2,128], index: 2, kind: input, shape index: {}]   ;;  %s800_s3 = inlined_call_operand.vmem [shape: f32[2,128], index: 3, kind: input, shape index: {}]   ;;  %s801_s4 = inlined_call_operand.vmem [shape: f32[128,128], index: 4, kind: output, shape index: {}]  }
   0x1   :  { %v584_v0 = vld [vmem:[%s797_s1] sm:$0xff]   ;;  %v585_v1 = vld [vmem:[%s797_s1 + $0x8] sm:$0xff]   ;;  %v586_v2 = vld [vmem:[%s797_s1 + $0x10] sm:$0xff]  }
   0x2   :  { %520 = vmatprep.subr.bf16.mxu0 %v584_v0  ;;  %v587_v3 = vld [vmem:[%s797_s1 + $0x18] sm:$0xff]   ;;  %v592_v4 = vld [vmem:[%s798_s0] sm:$0xff]   ;;  %v589_v6 = vld [vmem:[%s797_s1 + $0x28] sm:$0xff]  }
   0x3   :  { %521 = vmatpush3.bf16.msra.mxu0 %v584_v0  ;;  %536 = vmatprep.mubr.bf16.mxu0 %v592_v4  ;;  %v588_v5 = vld [vmem:[%s797_s1 + $0x20] sm:$0xff]   ;;  %v590_v7 = vld [vmem:[%s797_s1 + $0x30] sm:$0xff]   ;;  %v591_v8 = vld [vmem:[%s797_s1 + $0x38] sm:$0xff]  }
   0x4   :  { %522 = vmatprep.subr.bf16.mxu0 %v585_v1  ;;  %568 = vmatprep.mubr.bf16.mxu1 %v592_v4  ;;  %v655_v9 = vld [vmem:[%s798_s0 + $0x8] sm:$0xff]   ;;  %v660_v10 = vld [vmem:[%s798_s0 + $0x10] sm:$0xff]   ;;  %v667_v11 = vld [vmem:[%s798_s0 + $0x18] sm:$0xff]  }
   0x5   :  { %v672_v12 = vld [vmem:[%s798_s0 + $0x20] sm:$0xff]   ;;  %v679_v13 = vld [vmem:[%s798_s0 + $0x28] sm:$0xff]   ;;  %v684_v14 = vld [vmem:[%s798_s0 + $0x30] sm:$0xff]  }
   0x6   :  { %v691_v15 = vld [vmem:[%s798_s0 + $0x38] sm:$0xff]   ;;  %v697_v16 = vld [vmem:[%s799_s2] ss:$0 sm:$0xff] }
   0x7   :  { %523 = vmatpush3.bf16.msra.mxu0 %v585_v1  ;;  %v702_v18 = vld [vmem:[%s800_s3] ss:$0 sm:$0xff] }
   0x8   :  { %524 = vmatprep.subr.bf16.mxu0 %v586_v2 }
   0xb   :  { %525 = vmatpush3.bf16.msra.mxu0 %v586_v2 }
   0xc   :  { %526 = vmatprep.subr.bf16.mxu0 %v587_v3 }
   0xf   :  { %527 = vmatpush3.bf16.msra.mxu0 %v587_v3 }
  0x10   :  { %528 = vmatprep.subr.bf16.mxu0 %v588_v5 }
  0x13   :  { %529 = vmatpush3.bf16.msra.mxu0 %v588_v5 }
  0x14   :  { %530 = vmatprep.subr.bf16.mxu0 %v589_v6 }
  0x17   :  { %531 = vmatpush3.bf16.msra.mxu0 %v589_v6 }
  0x18   :  { %532 = vmatprep.subr.bf16.mxu0 %v590_v7 }
  0x1b   :  { %533 = vmatpush3.bf16.msra.mxu0 %v590_v7 }
  0x1c   :  { %534 = vmatprep.subr.bf16.mxu0 %v591_v8 }
  0x1f   :  { %535 = vmatpush3.bf16.msra.mxu0 %v591_v8 }
  0x22   :  { %537 = vmatmul.mubr.bf16.vlgmr.msra.gmra.mrb[0].mxu0 %v655_v9 }
  0x23   :  { %540 = vmatprep.mubr.bf16.mxu0 %v660_v10 }
  0x2a   :  { %541 = vmatmul.mubr.bf16.gmra.mrb[4].mxu0 %v667_v11 }
  0x2b   :  { %544 = vmatprep.mubr.bf16.mxu0 %v672_v12 }
  0x32   :  { %545 = vmatmul.mubr.bf16.gmra.mrb[8].mxu0 %v679_v13 }
  0x33   :  { %548 = vmatprep.mubr.bf16.mxu0 %v684_v14 }
  0x3a   :  { %549 = vmatmul.mubr.bf16.gmra.mrb[12].mxu0 %v691_v15 }
  0xf5   :  { %v538_v17 = vpop.f32.mrb[0].mxu0 }
  0xf6   :  { %v250_v19 = vmul.f32 %v538_v17, %v697_v16  ;;  %v180_v20 = vpop.f32.mrb[1].mxu0 }
  0xf7   :  { %v248_v21 = vmul.f32 %v697_v16, %v180_v20  ;;  %v539_v22 = vpop.f32.mrb[2].mxu0 }
  0xf8   :  { %v271_v23 = vadd.f32 %v702_v18, %v250_v19  ;;  %v251_v24 = vmul.f32 %v539_v22, %v697_v16  ;;  %v183_v25 = vpop.f32.mrb[3].mxu0 }
  0xf9   :  { %v269_v26 = vadd.f32 %v702_v18, %v248_v21  ;;  %v249_v27 = vmul.f32 %v697_v16, %v183_v25 }
  0xfa   :  { %v272_v28 = vadd.f32 %v702_v18, %v251_v24  ;;  %v287_v30 = vmax.f32 %v271_v23, 0.0 }
  0xfb   :  { %v270_v29 = vadd.f32 %v702_v18, %v249_v27  ;;  %v285_v32 = vmax.f32 %v269_v26, 0.0 }
  0xfc   :  { %v288_v31 = vmax.f32 %v272_v28, 0.0 }
  0xfd   :  { %v286_v33 = vmax.f32 %v270_v29, 0.0  ;;  %v542_v34 = vpop.f32.mrb[4].mxu0 }
  0xfe   :  { %v254_v35 = vmul.f32 %v542_v34, %v697_v16  ;;  %v196_v36 = vpop.f32.mrb[5].mxu0  ;;  %v302_v37 = vpack.c.bf16 %v288_v31, %v287_v30 }
  0xff   :  { %v252_v38 = vmul.f32 %v697_v16, %v196_v36  ;;  %v543_v39 = vpop.f32.mrb[6].mxu0  ;;  %v301_v40 = vpack.c.bf16 %v286_v33, %v285_v32 }
 0x100   :  { %v275_v41 = vadd.f32 %v702_v18, %v254_v35  ;;  %v255_v42 = vmul.f32 %v543_v39, %v697_v16  ;;  %v199_v43 = vpop.f32.mrb[7].mxu0 }
 0x101   :  { %v273_v44 = vadd.f32 %v702_v18, %v252_v38  ;;  %v253_v45 = vmul.f32 %v697_v16, %v199_v43  ;;  %552 = vmatprep.subr.bf16.mxu1 %v301_v40 }
 0x102   :  { %v276_v46 = vadd.f32 %v702_v18, %v255_v42  ;;  %553 = vmatpush3.bf16.msra.mxu1 %v301_v40  ;;  %v291_v48 = vmax.f32 %v275_v41, 0.0 }
 0x103   :  { %v274_v47 = vadd.f32 %v702_v18, %v253_v45  ;;  %554 = vmatprep.subr.bf16.mxu1 %v302_v37  ;;  %v289_v50 = vmax.f32 %v273_v44, 0.0 }
 0x104   :  { %v292_v49 = vmax.f32 %v276_v46, 0.0 }
 0x105   :  { %v290_v51 = vmax.f32 %v274_v47, 0.0  ;;  %v546_v52 = vpop.f32.mrb[8].mxu0 }
 0x106   :  { %v258_v53 = vmul.f32 %v546_v52, %v697_v16  ;;  %v212_v54 = vpop.f32.mrb[9].mxu0  ;;  %555 = vmatpush3.bf16.msra.mxu1 %v302_v37  ;;  %v304_v55 = vpack.c.bf16 %v292_v49, %v291_v48 }
 0x107   :  { %v256_v56 = vmul.f32 %v697_v16, %v212_v54  ;;  %v547_v57 = vpop.f32.mrb[10].mxu0  ;;  %v303_v58 = vpack.c.bf16 %v290_v51, %v289_v50 }
 0x108   :  { %v279_v59 = vadd.f32 %v702_v18, %v258_v53  ;;  %v259_v60 = vmul.f32 %v547_v57, %v697_v16  ;;  %v215_v61 = vpop.f32.mrb[11].mxu0 }
 0x109   :  { %v277_v62 = vadd.f32 %v702_v18, %v256_v56  ;;  %v257_v63 = vmul.f32 %v697_v16, %v215_v61  ;;  %556 = vmatprep.subr.bf16.mxu1 %v303_v58 }
 0x10a   :  { %v280_v0 = vadd.f32 %v702_v18, %v259_v60  ;;  %557 = vmatpush3.bf16.msra.mxu1 %v303_v58  ;;  %v295_v2 = vmax.f32 %v279_v59, 0.0 }
 0x10b   :  { %v278_v1 = vadd.f32 %v702_v18, %v257_v63  ;;  %558 = vmatprep.subr.bf16.mxu1 %v304_v55  ;;  %v293_v4 = vmax.f32 %v277_v62, 0.0 }
 0x10c   :  { %v296_v3 = vmax.f32 %v280_v0, 0.0 }
 0x10d   :  { %v294_v5 = vmax.f32 %v278_v1, 0.0  ;;  %v550_v6 = vpop.f32.mrb[12].mxu0 }
 0x10e   :  { %v262_v7 = vmul.f32 %v550_v6, %v697_v16  ;;  %v228_v8 = vpop.f32.mrb[13].mxu0  ;;  %559 = vmatpush3.bf16.msra.mxu1 %v304_v55  ;;  %v306_v17 = vpack.c.bf16 %v296_v3, %v295_v2 }
 0x10f   :  { %v260_v19 = vmul.f32 %v697_v16, %v228_v8  ;;  %v551_v20 = vpop.f32.mrb[14].mxu0  ;;  %v305_v21 = vpack.c.bf16 %v294_v5, %v293_v4 }
 0x110   :  { %v283_v22 = vadd.f32 %v702_v18, %v262_v7  ;;  %v263_v23 = vmul.f32 %v551_v20, %v697_v16  ;;  %v231_v24 = vpop.f32.mrb[15].mxu0 }
 0x111   :  { %v281_v25 = vadd.f32 %v702_v18, %v260_v19  ;;  %v261_v26 = vmul.f32 %v697_v16, %v231_v24  ;;  %560 = vmatprep.subr.bf16.mxu1 %v305_v21  ;;  %v486_v16 = vld [vmem:[%s799_s2 + $0x1] ss:$0 sm:$0xff] }
 0x112   :  { %v284_v27 = vadd.f32 %v702_v18, %v263_v23  ;;  %561 = vmatpush3.bf16.msra.mxu1 %v305_v21  ;;  %v299_v29 = vmax.f32 %v283_v22, 0.0 }
 0x113   :  { %v282_v28 = vadd.f32 %v702_v18, %v261_v26  ;;  %562 = vmatprep.subr.bf16.mxu1 %v306_v17  ;;  %v297_v31 = vmax.f32 %v281_v25, 0.0 }
 0x114   :  { %v300_v30 = vmax.f32 %v284_v27, 0.0 }
 0x115   :  { %v298_v32 = vmax.f32 %v282_v28, 0.0 }
 0x116   :  { %563 = vmatpush3.bf16.msra.mxu1 %v306_v17  ;;  %v308_v33 = vpack.c.bf16 %v300_v30, %v299_v29 }
 0x117   :  { %v307_v34 = vpack.c.bf16 %v298_v32, %v297_v31 }
 0x119   :  { %564 = vmatprep.subr.bf16.mxu1 %v307_v34 }
 0x11a   :  { %565 = vmatpush3.bf16.msra.mxu1 %v307_v34 }
 0x11b   :  { %566 = vmatprep.subr.bf16.mxu1 %v308_v33 }
 0x11e   :  { %567 = vmatpush3.bf16.msra.mxu1 %v308_v33 }
 0x121   :  { %569 = vmatmul.mubr.bf16.vlgmr.msra.gmra.mrb[0].mxu1 %v655_v9  ;;  %v487_v9 = vld [vmem:[%s800_s3 + $0x1] ss:$0 sm:$0xff] }
 0x122   :  { %572 = vmatprep.mubr.bf16.mxu1 %v660_v10 }
 0x129   :  { %573 = vmatmul.mubr.bf16.gmra.mrb[4].mxu1 %v667_v11 }
 0x12a   :  { %576 = vmatprep.mubr.bf16.mxu1 %v672_v12 }
 0x131   :  { %577 = vmatmul.mubr.bf16.gmra.mrb[8].mxu1 %v679_v13 }
 0x132   :  { %580 = vmatprep.mubr.bf16.mxu1 %v684_v14 }
 0x139   :  { %581 = vmatmul.mubr.bf16.gmra.mrb[12].mxu1 %v691_v15 }
 0x1f4   :  { %v570_v18 = vpop.f32.mrb[0].mxu1 }
 0x1f5   :  { %v413_v10 = vmul.f32 %v570_v18, %v486_v16  ;;  %v343_v35 = vpop.f32.mrb[1].mxu1 }
 0x1f6   :  { %v411_v11 = vmul.f32 %v486_v16, %v343_v35  ;;  %v571_v36 = vpop.f32.mrb[2].mxu1 }
 0x1f7   :  { %v434_v12 = vadd.f32 %v487_v9, %v413_v10  ;;  %v414_v37 = vmul.f32 %v571_v36, %v486_v16  ;;  %v346_v13 = vpop.f32.mrb[3].mxu1 }
 0x1f8   :  { %v432_v38 = vadd.f32 %v487_v9, %v411_v11  ;;  %v412_v14 = vmul.f32 %v486_v16, %v346_v13 }
 0x1f9   :  { %450 = vst [vmem:[%s801_s4 + $0x10] sm:$0xff] %v434_v12  ;;  %v435_v15 = vadd.f32 %v487_v9, %v414_v37 }
 0x1fa   :  { %448 = vst [vmem:[%s801_s4] sm:$0xff] %v432_v38  ;;  %v433_v39 = vadd.f32 %v487_v9, %v412_v14 }
 0x1fb   :  { %451 = vst [vmem:[%s801_s4 + $0x18] sm:$0xff] %v435_v15 }
 0x1fc   :  { %449 = vst [vmem:[%s801_s4 + $0x8] sm:$0xff] %v433_v39  ;;  %v574_v40 = vpop.f32.mrb[4].mxu1 }
 0x1fd   :  { %v417_v41 = vmul.f32 %v574_v40, %v486_v16  ;;  %v359_v42 = vpop.f32.mrb[5].mxu1 }
 0x1fe   :  { %v415_v43 = vmul.f32 %v486_v16, %v359_v42  ;;  %v575_v44 = vpop.f32.mrb[6].mxu1 }
 0x1ff   :  { %v438_v45 = vadd.f32 %v487_v9, %v417_v41  ;;  %v418_v46 = vmul.f32 %v575_v44, %v486_v16  ;;  %v362_v47 = vpop.f32.mrb[7].mxu1 }
 0x200   :  { %v436_v48 = vadd.f32 %v487_v9, %v415_v43  ;;  %v416_v49 = vmul.f32 %v486_v16, %v362_v47 }
 0x201   :  { %454 = vst [vmem:[%s801_s4 + $0x30] sm:$0xff] %v438_v45  ;;  %v439_v50 = vadd.f32 %v487_v9, %v418_v46 }
 0x202   :  { %452 = vst [vmem:[%s801_s4 + $0x20] sm:$0xff] %v436_v48  ;;  %v437_v51 = vadd.f32 %v487_v9, %v416_v49 }
 0x203   :  { %455 = vst [vmem:[%s801_s4 + $0x38] sm:$0xff] %v439_v50 }
 0x204   :  { %453 = vst [vmem:[%s801_s4 + $0x28] sm:$0xff] %v437_v51  ;;  %v578_v52 = vpop.f32.mrb[8].mxu1 }
 0x205   :  { %v421_v53 = vmul.f32 %v578_v52, %v486_v16  ;;  %v375_v54 = vpop.f32.mrb[9].mxu1 }
 0x206   :  { %v419_v55 = vmul.f32 %v486_v16, %v375_v54  ;;  %v579_v56 = vpop.f32.mrb[10].mxu1 }
 0x207   :  { %v442_v57 = vadd.f32 %v487_v9, %v421_v53  ;;  %v422_v58 = vmul.f32 %v579_v56, %v486_v16  ;;  %v378_v59 = vpop.f32.mrb[11].mxu1 }
 0x208   :  { %v440_v60 = vadd.f32 %v487_v9, %v419_v55  ;;  %v420_v61 = vmul.f32 %v486_v16, %v378_v59 }
 0x209   :  { %458 = vst [vmem:[%s801_s4 + $0x50] sm:$0xff] %v442_v57  ;;  %v443_v62 = vadd.f32 %v487_v9, %v422_v58 }
 0x20a   :  { %456 = vst [vmem:[%s801_s4 + $0x40] sm:$0xff] %v440_v60  ;;  %v441_v63 = vadd.f32 %v487_v9, %v420_v61 }
 0x20b   :  { %459 = vst [vmem:[%s801_s4 + $0x58] sm:$0xff] %v443_v62 }
 0x20c   :  { %457 = vst [vmem:[%s801_s4 + $0x48] sm:$0xff] %v441_v63  ;;  %v582_v0 = vpop.f32.mrb[12].mxu1 }
 0x20d   :  { %v425_v1 = vmul.f32 %v582_v0, %v486_v16  ;;  %v391_v2 = vpop.f32.mrb[13].mxu1 }
 0x20e   :  { %v423_v3 = vmul.f32 %v486_v16, %v391_v2  ;;  %v583_v4 = vpop.f32.mrb[14].mxu1 }
 0x20f   :  { %v446_v5 = vadd.f32 %v487_v9, %v425_v1  ;;  %v426_v6 = vmul.f32 %v583_v4, %v486_v16  ;;  %v394_v7 = vpop.f32.mrb[15].mxu1 }
 0x210   :  { %v444_v8 = vadd.f32 %v487_v9, %v423_v3  ;;  %v424_v17 = vmul.f32 %v486_v16, %v394_v7 }
 0x211   :  { %462 = vst [vmem:[%s801_s4 + $0x70] sm:$0xff] %v446_v5  ;;  %v447_v19 = vadd.f32 %v487_v9, %v426_v6 }
 0x212   :  { %460 = vst [vmem:[%s801_s4 + $0x60] sm:$0xff] %v444_v8  ;;  %v445_v20 = vadd.f32 %v487_v9, %v424_v17 }
 0x213   :  { %463 = vst [vmem:[%s801_s4 + $0x78] sm:$0xff] %v447_v19 }
 0x214   :  { %461 = vst [vmem:[%s801_s4 + $0x68] sm:$0xff] %v445_v20 }

</bundles_post_ra>
